<compile_context>
chip_gen: v7x
topology: tpu7x:2x2x1
jax: 0.10.0
libtpu: 0.0.40
codegen_flags: <defaults>
</compile_context>

<pallas_src>
import math

import jax
import jax.numpy as jnp
from jax.experimental import pallas as pl
from jax.experimental.pallas import tpu as pltpu


def _gaussian_taps_1d(kernel_size: int, sigma: float):
    """Normalized 1-D Gaussian taps (the module's 2-D kernel is their outer
    product, already normalized, broadcast to all channels)."""
    mean = (kernel_size - 1) / 2.0
    g = [
        math.exp(-(((i - mean) / sigma) ** 2) / 2.0) / (sigma * math.sqrt(2.0 * math.pi))
        for i in range(kernel_size)
    ]
    s = sum(g)
    return [v / s for v in g]


def _gaussian_weight_2d(channels: int, kernel_size: int, sigma: float) -> jnp.ndarray:
    """Replicates the torch __init__ weight construction (dim=2), for the reference."""
    coords = jnp.arange(kernel_size, dtype=jnp.float32)
    mean = (kernel_size - 1) / 2.0
    g = (1.0 / (sigma * math.sqrt(2.0 * math.pi))) * jnp.exp(
        -(((coords - mean) / sigma) ** 2) / 2.0
    )
    k2d = g[:, None] * g[None, :]
    k2d = k2d / jnp.sum(k2d)
    return jnp.broadcast_to(k2d, (channels, kernel_size, kernel_size)).astype(jnp.float32)


def _make_kernel(C, H, W, KH, KW, Ho, Wo, gv, gh):
    """gv/gh: Python-float 1-D taps along H / W (shared by all channels)."""

    def kernel(x_ref, o_ref, tmp_ref):
        # x_ref:   (1, C, H, W)   VMEM
        # o_ref:   (1, C, Ho, Wo) VMEM
        # tmp_ref: (C, Ho, W)     VMEM f32 scratch (vertical-pass result)

        # --- vertical pass: tmp[c, ho, w] = sum_kh gv[kh] * x[c, ho+kh, w] ---
        acc = gv[0] * x_ref[0, :, 0:Ho, :].astype(jnp.float32)
        for kh in range(1, KH):
            acc = acc + gv[kh] * x_ref[0, :, kh:kh + Ho, :].astype(jnp.float32)
        tmp_ref[...] = acc

        # --- horizontal pass: out[c, ho, wo] = sum_kw gh[kw] * tmp[c, ho, wo+kw] ---
        acc2 = gh[0] * tmp_ref[:, :, 0:Wo]
        for kw in range(1, KW):
            acc2 = acc2 + gh[kw] * tmp_ref[:, :, kw:kw + Wo]
        o_ref[0, :, :, :] = acc2.astype(o_ref.dtype)

    return kernel


def gaussian_smoothing(x: jnp.ndarray, taps_h, taps_w) -> jnp.ndarray:
    """Depthwise VALID 2-D Gaussian blur of x (N,C,H,W) with the separable taps
    `taps_h` (along H) and `taps_w` (along W), shared by every channel.
    Matches F.conv2d(x, weight[:, None], groups=C) for the module's weight."""
    N, C, H, W = x.shape
    KH, KW = len(taps_h), len(taps_w)
    assert H >= KH and W >= KW, "input spatial dims smaller than kernel (VALID padding)"
    Ho, Wo = H - KH + 1, W - KW + 1

    gv = [float(v) for v in taps_h]
    gh = [float(v) for v in taps_w]

    kernel = _make_kernel(C, H, W, KH, KW, Ho, Wo, gv, gh)

    itemsize = jnp.dtype(x.dtype).itemsize
    in_block_bytes = C * H * W * itemsize
    out_block_bytes = C * Ho * Wo * itemsize
    tmp_bytes = C * Ho * W * 4
    # double-buffered in/out blocks + scratch + 1 MiB slack; clamp to [16, 64] MiB
    vmem_needed = 2 * (in_block_bytes + out_block_bytes) + tmp_bytes + (1 << 20)
    vmem_limit = int(min(max(vmem_needed, 16 * 1024 * 1024), 64 * 1024 * 1024))

    flops = 2 * N * C * (Ho * W * KH + Ho * Wo * KW)      # separable: ~2K MACs/output
    bytes_accessed = N * (in_block_bytes + out_block_bytes)

    return pl.pallas_call(
        kernel,
        out_shape=jax.ShapeDtypeStruct((N, C, Ho, Wo), x.dtype),
        grid_spec=pltpu.PrefetchScalarGridSpec(
            num_scalar_prefetch=0,
            grid=(N,),
            in_specs=[pl.BlockSpec((1, C, H, W), lambda n: (n, 0, 0, 0))],
            out_specs=pl.BlockSpec((1, C, Ho, Wo), lambda n: (n, 0, 0, 0)),
            scratch_shapes=[pltpu.VMEM((C, Ho, W), jnp.float32)],
        ),
        compiler_params=pltpu.CompilerParams(
            dimension_semantics=("parallel",),
            vmem_limit_bytes=vmem_limit,
        ),
        cost_estimate=pl.CostEstimate(
            flops=flops, transcendentals=0, bytes_accessed=bytes_accessed
        ),
    )(x)


def _reference(x, weight):
    # Plain-JAX reference: depthwise conv via feature_group_count.
    C = weight.shape[0]
    return jax.lax.conv_general_dilated(
        x,
        weight[:, None, :, :],                 # (C, 1, KH, KW) == OIHW with I=1
        window_strides=(1, 1),
        padding="VALID",
        dimension_numbers=("NCHW", "OIHW", "NCHW"),
        feature_group_count=C,
    )


if __name__ == "__main__":
    # Module config: channels=4, kernel_size=3, sigma=1.5, dim=2
    channels, kernel_size, sigma = 4, 3, 1.5

    key = jax.random.PRNGKey(0)
    x = jax.random.normal(key, (2, channels, 16, 16), dtype=jnp.float32)

    taps = _gaussian_taps_1d(kernel_size, sigma)
    out = gaussian_smoothing(x, taps, taps)
    out = jax.block_until_ready(out)

    weight = _gaussian_weight_2d(channels, kernel_size, sigma)
    ref = jax.block_until_ready(_reference(x, weight))

    assert out.shape == (2, channels, 14, 14), out.shape
    assert jnp.allclose(out, ref, atol=1e-5, rtol=1e-5), "mismatch vs reference conv"

    print("KERNEL_OK")
</pallas_src>

<mosaic_0001>
module attributes {stable_mosaic.version = 11 : i64} {
  func.func @kernel(%arg0: i32, %arg1: memref<1x4x16x16xf32, #tpu.memory_space<vmem>>, %arg2: memref<1x4x14x14xf32, #tpu.memory_space<vmem>>, %arg3: memref<4x14x16xf32, #tpu.memory_space<vmem>>) attributes {dimension_semantics = [#tpu.dimension_semantics<parallel>], iteration_bounds = array<i64: 2>, scalar_prefetch = 0 : i64, scratch_operands = 1 : i64, tpu.core_type = #tpu.core_type<tc>, window_params = [{transform_indices = @transform_0, window_bounds = array<i64: 1, 4, 16, 16>}, {transform_indices = @transform_1, window_bounds = array<i64: 1, 4, 14, 14>}]} {
    %c0 = arith.constant 0 : index
    %c0_0 = arith.constant 0 : index
    %c0_1 = arith.constant 0 : index
    %c0_2 = arith.constant 0 : index
    %0 = vector.load %arg1[%c0, %c0_0, %c0_1, %c0_2] : memref<1x4x16x16xf32, #tpu.memory_space<vmem>>, vector<1x4x14x16xf32>
    %1 = vector.shape_cast %0 : vector<1x4x14x16xf32> to vector<4x14x16xf32>
    %cst = arith.constant 0.307801336 : f32
    %2 = vector.broadcast %cst : f32 to vector<4x14x16xf32>
    %3 = arith.mulf %2, %1 : vector<4x14x16xf32>
    %c0_3 = arith.constant 0 : index
    %c0_4 = arith.constant 0 : index
    %c1 = arith.constant 1 : index
    %c0_5 = arith.constant 0 : index
    %4 = vector.load %arg1[%c0_3, %c0_4, %c1, %c0_5] : memref<1x4x16x16xf32, #tpu.memory_space<vmem>>, vector<1x4x14x16xf32>
    %5 = vector.shape_cast %4 : vector<1x4x14x16xf32> to vector<4x14x16xf32>
    %cst_6 = arith.constant 0.384397328 : f32
    %6 = vector.broadcast %cst_6 : f32 to vector<4x14x16xf32>
    %7 = arith.mulf %6, %5 : vector<4x14x16xf32>
    %8 = arith.addf %3, %7 : vector<4x14x16xf32>
    %c0_7 = arith.constant 0 : index
    %c0_8 = arith.constant 0 : index
    %c2 = arith.constant 2 : index
    %c0_9 = arith.constant 0 : index
    %9 = vector.load %arg1[%c0_7, %c0_8, %c2, %c0_9] : memref<1x4x16x16xf32, #tpu.memory_space<vmem>>, vector<1x4x14x16xf32>
    %10 = vector.shape_cast %9 : vector<1x4x14x16xf32> to vector<4x14x16xf32>
    %cst_10 = arith.constant 0.307801336 : f32
    %11 = vector.broadcast %cst_10 : f32 to vector<4x14x16xf32>
    %12 = arith.mulf %11, %10 : vector<4x14x16xf32>
    %13 = arith.addf %8, %12 : vector<4x14x16xf32>
    %c0_11 = arith.constant 0 : index
    %c0_12 = arith.constant 0 : index
    %c0_13 = arith.constant 0 : index
    %14 = vector.load %arg3[%c0_11, %c0_12, %c0_13] : memref<4x14x16xf32, #tpu.memory_space<vmem>>, vector<4x14x16xf32>
    tpu.vector_store %arg3[%c0_11, %c0_12, %c0_13], %13 {strides = array<i32>} : memref<4x14x16xf32, #tpu.memory_space<vmem>>, vector<4x14x16xf32>,
    %c0_14 = arith.constant 0 : index
    %c0_15 = arith.constant 0 : index
    %c0_16 = arith.constant 0 : index
    %15 = vector.load %arg3[%c0_14, %c0_15, %c0_16] : memref<4x14x16xf32, #tpu.memory_space<vmem>>, vector<4x14x14xf32>
    %cst_17 = arith.constant 0.307801336 : f32
    %16 = vector.broadcast %cst_17 : f32 to vector<4x14x14xf32>
    %17 = arith.mulf %16, %15 : vector<4x14x14xf32>
    %c0_18 = arith.constant 0 : index
    %c0_19 = arith.constant 0 : index
    %c1_20 = arith.constant 1 : index
    %18 = vector.load %arg3[%c0_18, %c0_19, %c1_20] : memref<4x14x16xf32, #tpu.memory_space<vmem>>, vector<4x14x14xf32>
    %cst_21 = arith.constant 0.384397328 : f32
    %19 = vector.broadcast %cst_21 : f32 to vector<4x14x14xf32>
    %20 = arith.mulf %19, %18 : vector<4x14x14xf32>
    %21 = arith.addf %17, %20 : vector<4x14x14xf32>
    %c0_22 = arith.constant 0 : index
    %c0_23 = arith.constant 0 : index
    %c2_24 = arith.constant 2 : index
    %22 = vector.load %arg3[%c0_22, %c0_23, %c2_24] : memref<4x14x16xf32, #tpu.memory_space<vmem>>, vector<4x14x14xf32>
    %cst_25 = arith.constant 0.307801336 : f32
    %23 = vector.broadcast %cst_25 : f32 to vector<4x14x14xf32>
    %24 = arith.mulf %23, %22 : vector<4x14x14xf32>
    %25 = arith.addf %21, %24 : vector<4x14x14xf32>
    %c0_26 = arith.constant 0 : index
    %c0_27 = arith.constant 0 : index
    %c0_28 = arith.constant 0 : index
    %c0_29 = arith.constant 0 : index
    %26 = vector.load %arg2[%c0_26, %c0_27, %c0_28, %c0_29] : memref<1x4x14x14xf32, #tpu.memory_space<vmem>>, vector<1x4x14x14xf32>
    %27 = vector.shape_cast %26 : vector<1x4x14x14xf32> to vector<4x14x14xf32>
    %28 = vector.shape_cast %25 : vector<4x14x14xf32> to vector<1x4x14x14xf32>
    tpu.vector_store %arg2[%c0_26, %c0_27, %c0_28, %c0_29], %28 {strides = array<i32>} : memref<1x4x14x14xf32, #tpu.memory_space<vmem>>, vector<1x4x14x14xf32>,
    return
  }
  func.func @transform_0(%arg0: i32) -> (i32, i32, i32, i32) {
    %c0_i32 = arith.constant 0 : i32
    %c0_i32_0 = arith.constant 0 : i32
    %c0_i32_1 = arith.constant 0 : i32
    %c0_i32_2 = arith.constant 0 : i32
    return %arg0, %c0_i32, %c0_i32_0, %c0_i32_1 : i32, i32, i32, i32
  }
  func.func @transform_1(%arg0: i32) -> (i32, i32, i32, i32) {
    %c0_i32 = arith.constant 0 : i32
    %c0_i32_0 = arith.constant 0 : i32
    %c0_i32_1 = arith.constant 0 : i32
    %c0_i32_2 = arith.constant 0 : i32
    return %arg0, %c0_i32, %c0_i32_0, %c0_i32_1 : i32, i32, i32, i32
  }
}

</mosaic_0001>

<bundles_post_ra>
// kernel: tpu_custom_call.1
= control target key start
LH: loop header
LB: loop body
LE: loop exit
PB: predicated region body
PF: predicated region fallthrough
CT: control target
= control target key end

     0   :  { %6 = vsyncpa [#allocation4], 0  ;;  %s690_s0 = inlined_call_operand.hbm [shape: f32[2,4,16,16], index: 0, kind: input, shape index: {}]   ;;  %s691_s1 = inlined_call_operand.vmem [shape: f32[2,4,14,14], index: 1, kind: output, shape index: {}]  }
   0x1   :  { %8 = vsyncpa [#allocation4 + $0x1], 0  ;;  %s530_s6 = smov 0   ;;  %s532_s7 = smov 0  }
   0x2   :  { %s534_s8 = smov 0   ;;  %s536_s9 = smov 0  }
   0x3 LB: > { %s549_s10 = sadd.s32 4294967295, %s513_s9   ;;  %s552_s11 = sadd.s32 1, %s513_s9   ;;  %s513_s9 = sphi %s536_s9, %s698_s9   ;;  %s509_s8 = sphi %s534_s8, %s697_s8   ;;  %s505_s7 = sphi %s532_s7, %s696_s7   ;;  %s501_s6 = sphi %s530_s6, %s695_s6  }
   0x4   : > { %s18_s12 = ssub.s32 %s513_s9, %s552_s11  ;;  %s21_s13 = sadd.s32 1, %s509_s8 }
   0x5   : > { %p19_p0 = scmp.eq.s32.totalorder %s18_s12, 0  ;;  %p28_p1 = scmp.ne.s32.totalorder %s509_s8, %s505_s7 }
   0x6   : > { %p29_p2 = scmp.eq.s32.totalorder %s513_s9, 0  ;;  %p34_p3 = scmp.ne.s32.totalorder %s505_s7, %s501_s6 }
   0x7   : > { %s562_s14 = scalar_select %p19_p0, %s509_s8, %s21_s13  }
   0x8   : > { %p30_p4 = por %p29_p2, %p28_p1  ;;  %p35_p5 = scmp.eq.s32.totalorder %s549_s10, 0 }
   0x9   : > { %p412_p6 = scmp.lt.s32.totalorder %s513_s9, 2  ;;  %s84_s16 = sand.u32 1, %s509_s8  }
   0xa   : > { %p566_p7 = por %p35_p5, %p34_p3  ;;  %s395_s17 = sshll.u32 %s84_s16, 6 }
   0xb   : > { %s404_s18 = sshll.u32 %s513_s9, 10  ;;  %s88_s22 = scalar_lea.vmem [#allocation3], %s395_s17 }
   0xc   : > { %s575_s21 = scalar_lea.hbm %s690_s0, %s404_s18  ;;  %s95_s23 = sshll.u32 %s88_s22, 4  ;;  %s577_s23 = int_to_ptr.vmem [resolvable:$true] %s95_s23 }
   0xd   : > { %p579_p8 = pnand %p412_p6, %p30_p4  ;;  %s584_s25 = scalar_lea.sflag [#allocation4], %s84_s16 }
   0xe   : > { %s449_s26 = scalar_lea.hbm %s575_s21, 1024  ;;  %s454_s29 = scalar_lea.hbm %s690_s0, 2048 }
   0xf   : > { %p450_p10 = scmp.ne.s32.totalorder %s575_s21, %s449_s26  ;;  %p451_p11 = pneg %p579_p8 }
  0x10   : > { %p455_p0 = scmp.lt.u32.totalorder %s575_s21, %s690_s0  ;;  %p456_p1 = scmp.lt.u32.totalorder %s454_s29, %s449_s26 }
  0x11   : > { %p452_p12 = pnand %p451_p11, %p450_p10  ;;  %p458_p3 = scmp.lt.u32.totalorder %s449_s26, %s575_s21 }
  0x12   : > { %p457_p2 = por %p456_p1, %p455_p0 }
  0x13   : > { %p453_p13 = pneg %p452_p12 }
  0x14   : > { %p459_p4 = por %p458_p3, %p457_p2 }
  0x16   : > { %p460_p5 = pnand %p459_p4, %p453_p13 }
  0x18   : > { %463 = shalt.err (!%p460_p5)
}
  0x19   : > { %s464_s3 = scalar_lea.vmem %s577_s23, 1024  ;;  %s515_s4 = smov [#allocation3]  }
  0x1a   : > { %p465_p6 = scmp.ne.s32.totalorder %s577_s23, %s464_s3  ;;  %s469_s5 = sshll.u32 %s515_s4, 4  ;;  %s470_s5 = int_to_ptr.vmem [resolvable:$false] %s469_s5 }
  0x1b   : > { %s471_s6 = scalar_lea.vmem %s470_s5, 2048  ;;  %p472_p9 = scmp.lt.s32.totalorder %s577_s23, %s470_s5 }
  0x1c   : > { %p467_p10 = pnand %p465_p6, %p451_p11  ;;  %p473_p0 = scmp.lt.s32.totalorder %s471_s6, %s464_s3 }
  0x1e   : > { %p468_p12 = pneg %p467_p10  ;;  %p474_p1 = por %p473_p0, %p472_p9 }
  0x20   : > { %p475_p2 = pnand %p474_p1, %p468_p12 }
  0x22   : > { %478 = shalt.err (!%p475_p2)
}
  0x23   : > { %s516_s12 = smov 128   ;;  %s517_s13 = smov 8  }
  0x24   : > { %411 = dma.hbm_to_vmem [thread:$0]  (!%p579_p8), %s575_s21, 1024, %s577_s23, %s584_s25, %s516_s12, %s516_s12, %s517_s13  }
  0x25   : > { %p103_p11 = scmp.lt.s32.totalorder %s513_s9, 3  ;;  %p694_p13 = scmp.ge.s32.totalorder %s513_s9, 1 }
  0x27   : > { %p104_p3 = pnand %p694_p13, %p103_p11 }
  0x28   : > { %s109_s16 = sand.u32 (!%p104_p3), 1, %s505_s7  }
  0x29   : > { %107 = sbr.rel (%p104_p3) target bundleno = 214 (0xd6), region = 24  ;;  %s399_s17 = sshll.u32 (!%p104_p3), %s109_s16, 6 }
  0x2a   : > { %s110_s18 = scalar_lea.sflag (!%p104_p3), [#allocation4], %s109_s16  ;;  %s616_s19 = scalar_lea.vmem (!%p104_p3), [#allocation3], %s399_s17 }
  0x30   : > { %496 = dma.done.wait (%p566_p7), %s110_s18, 1024  }
  0x31   : > { %498 = vsyncadd (%p566_p7), %s110_s18, 4294966272  ;;  %v139_v0 = vld [vmem:[%s616_s19 + $0x10] sm:$0xff]  ;;  %vm201_vm0 = vcmask 130048   ;;  %v137_v6 = vld [vmem:[%s616_s19] sm:$0xff]  ;;  %vm203_vm1 = vcmask 128000   ;;  %s518_s9 = smov 127  }
  0x32   : > { %v155_v1 = vld [vmem:[%s616_s19 + $0x11] sm:$0xff]  ;;  %v147_v3 = vmul.f32 0.30780134, %v139_v0  ;;  %v153_v7 = vld [vmem:[%s616_s19 + $0x1] sm:$0xff]  ;;  %v145_v10 = vmul.f32 0.30780134, %v137_v6 }
  0x33   : > { %v179_v2 = vld [vmem:[%s616_s19 + $0x12] sm:$0xff]  ;;  %v163_v4 = vmul.f32 0.38439733, %v155_v1  ;;  %v177_v8 = vld [vmem:[%s616_s19 + $0x2] sm:$0xff]  ;;  %v161_v11 = vmul.f32 0.38439733, %v153_v7 }
  0x34   : > { %v187_v5 = vmul.f32 0.30780134, %v179_v2  ;;  %v185_v12 = vmul.f32 0.30780134, %v177_v8  ;;  %v140_v13 = vld [vmem:[%s616_s19 + $0x18] sm:$0x3f] }
  0x35   : > { %v171_v9 = vadd.f32 %v163_v4, %v147_v3  ;;  %v156_v14 = vld [vmem:[%s616_s19 + $0x19] sm:$0x3f]  ;;  %v169_v17 = vadd.f32 %v161_v11, %v145_v10  ;;  %v148_v18 = vmul.f32 0.30780134, %v140_v13  ;;  %v138_v20 = vld [vmem:[%s616_s19 + $0x8] sm:$0x3f] }
  0x36   : > { %v180_v15 = vld [vmem:[%s616_s19 + $0x1a] sm:$0x3f]  ;;  %v164_v19 = vmul.f32 0.38439733, %v156_v14  ;;  %v146_v22 = vmul.f32 0.30780134, %v138_v20 }
  0x37   : > { %v195_v16 = vadd.f32 %v187_v5, %v171_v9  ;;  %v188_v21 = vmul.f32 0.30780134, %v180_v15  ;;  %v154_v23 = vld [vmem:[%s616_s19 + $0x9] sm:$0x3f]  ;;  %v193_v24 = vadd.f32 %v185_v12, %v169_v17  ;;  %v141_v36 = vld [vmem:[%s616_s19 + $0x20] sm:$0xff]  ;;  %v143_v52 = vld [vmem:[%s616_s19 + $0x30] sm:$0xff] }
  0x38   : > { %v172_v25 = vadd.f32 %v164_v19, %v148_v18  ;;  %v162_v26 = vmul.f32 0.38439733, %v154_v23  ;;  %v178_v27 = vld [vmem:[%s616_s19 + $0xa] sm:$0x3f]  ;;  %v157_v37 = vld [vmem:[%s616_s19 + $0x21] sm:$0xff]  ;;  %v159_v53 = vld [vmem:[%s616_s19 + $0x31] sm:$0xff] }
  0x39   : > { %205 = vst.msk [vmem:[#allocation2 + $0x10] sm:$0xff] %vm201_vm0, %v195_v16  ;;  %v142_v28 = vld [vmem:[%s616_s19 + $0x28] sm:$0x3f]  ;;  %v186_v29 = vmul.f32 0.30780134, %v178_v27  ;;  %202 = vst.msk [vmem:[#allocation2] sm:$0xff] %vm201_vm0, %v193_v24 }
  0x3a   : > { %v150_v30 = vmul.f32 0.30780134, %v142_v28  ;;  %v158_v31 = vld [vmem:[%s616_s19 + $0x29] sm:$0x3f]  ;;  %v196_v32 = vadd.f32 %v188_v21, %v172_v25  ;;  %v170_v33 = vadd.f32 %v162_v26, %v146_v22  ;;  %v149_v39 = vmul.f32 0.30780134, %v141_v36 }
  0x3b   : > { %v166_v34 = vmul.f32 0.38439733, %v158_v31  ;;  %v182_v35 = vld [vmem:[%s616_s19 + $0x2a] sm:$0x3f]  ;;  %v165_v40 = vmul.f32 0.38439733, %v157_v37 }
  0x3c   : > { %v190_v38 = vmul.f32 0.30780134, %v182_v35  ;;  %206 = vst.msk [vmem:[#allocation2 + $0x18] sm:$0x3f] %vm203_vm1, %v196_v32  ;;  %v194_v41 = vadd.f32 %v186_v29, %v170_v33  ;;  %v181_v43 = vld [vmem:[%s616_s19 + $0x22] sm:$0xff]  ;;  %v183_v59 = vld [vmem:[%s616_s19 + $0x32] sm:$0xff] }
  0x3d   : > { %v174_v42 = vadd.f32 %v166_v34, %v150_v30  ;;  %v144_v44 = vld [vmem:[%s616_s19 + $0x38] sm:$0x3f]  ;;  %v173_v46 = vadd.f32 %v165_v40, %v149_v39  ;;  %v189_v47 = vmul.f32 0.30780134, %v181_v43  ;;  %v151_v58 = vmul.f32 0.30780134, %v143_v52 }
  0x3e   : > { %v160_v45 = vld [vmem:[%s616_s19 + $0x39] sm:$0x3f]  ;;  %v152_v48 = vmul.f32 0.30780134, %v144_v44  ;;  %204 = vst.msk [vmem:[#allocation2 + $0x8] sm:$0x3f] %vm203_vm1, %v194_v41 }
  0x3f   : > { %v168_v49 = vmul.f32 0.38439733, %v160_v45  ;;  %v198_v50 = vadd.f32 %v190_v38, %v174_v42  ;;  %v184_v51 = vld [vmem:[%s616_s19 + $0x3a] sm:$0x3f]  ;;  %v197_v55 = vadd.f32 %v189_v47, %v173_v46  ;;  %v167_v61 = vmul.f32 0.38439733, %v159_v53 }
  0x40   : > { %v213_v54 = vld [vmem:[#allocation2 + $0x10] sm:$0xff]  ;;  %v192_v57 = vmul.f32 0.30780134, %v184_v51  ;;  %v211_v62 = vld [vmem:[#allocation2] sm:$0xff]  ;;  %v191_v0 = vmul.f32 0.30780134, %v183_v59 }
  0x41   : > { %v176_v56 = vadd.f32 %v168_v49, %v152_v48  ;;  %v229_v60 = vmul.f32 0.38439733, %v213_v54  ;;  %208 = vst.msk [vmem:[#allocation2 + $0x28] sm:$0x3f] %vm203_vm1, %v198_v50  ;;  %v227_v1 = vmul.f32 0.38439733, %v211_v62  ;;  %v175_v2 = vadd.f32 %v167_v61, %v151_v58 }
  0x42   : > { %207 = vst.msk [vmem:[#allocation2 + $0x20] sm:$0xff] %vm201_vm0, %v197_v55  ;;  %v219_v17 = vmul.f32 0.30780134, %v211_v62  ;;  %s519_s15 = smov 126   ;;  %v221_v19 = vmul.f32 0.30780134, %v213_v54 }
  0x43   : > { %v200_v63 = vadd.f32 %v192_v57, %v176_v56  ;;  %247 = vrot.lane.b32.xlu1 %v229_v60, %s518_s9  ;;  %v214_v3 = vld [vmem:[#allocation2 + $0x18] sm:$0x3f]  ;;  %243 = vrot.lane.b32.xlu0 %v227_v1, %s518_s9  ;;  %v199_v5 = vadd.f32 %v191_v0, %v175_v2  ;;  %p132_p7 = scmp.lt.s32.totalorder %s549_s10, 1  ;;  %vm317_vm2 = vcmask 111616   ;;  %vm315_vm3 = vcmask 113664  }
  0x44   : > { %v230_v4 = vmul.f32 0.38439733, %v214_v3  ;;  %v222_v18 = vmul.f32 0.30780134, %v214_v3 }
  0x45   : > { %210 = vst.msk [vmem:[#allocation2 + $0x38] sm:$0x3f] %vm203_vm1, %v200_v63  ;;  %v212_v6 = vld [vmem:[#allocation2 + $0x8] sm:$0x3f]  ;;  %s700_s10 = smov (!%p132_p7, %s549_s10), 1 }
  0x46   : > { %v228_v7 = vmul.f32 0.38439733, %v212_v6  ;;  %209 = vst.msk [vmem:[#allocation2 + $0x30] sm:$0xff] %vm201_vm0, %v199_v5  ;;  %v220_v16 = vmul.f32 0.30780134, %v212_v6  ;;  %s405_s20 = sshll.u32 %s700_s10, 6 }
  0x47   : > { %249 = vrot.lane.b32.xlu1 %v230_v4, %s518_s9  ;;  %s659_s23 = scalar_lea.vmem %s691_s1, %s405_s20 }
  0x48   : > { %v216_v8 = vld [vmem:[#allocation2 + $0x28] sm:$0x3f]  ;;  %245 = vrot.lane.b32.xlu0 %v228_v7, %s518_s9 }
  0x49   : > { %v232_v9 = vmul.f32 0.38439733, %v216_v8  ;;  %v215_v10 = vld [vmem:[#allocation2 + $0x20] sm:$0xff]  ;;  %v224_v20 = vmul.f32 0.30780134, %v216_v8 }
  0x4a   : > { %v231_v11 = vmul.f32 0.38439733, %v215_v10  ;;  %v223_v21 = vmul.f32 0.30780134, %v215_v10 }
  0x4b   : > { %253 = vrot.lane.b32.xlu1 %v232_v9, %s518_s9 }
  0x4c   : > { %v218_v12 = vld [vmem:[#allocation2 + $0x38] sm:$0x3f]  ;;  %251 = vrot.lane.b32.xlu0 %v231_v11, %s518_s9 }
  0x4d   : > { %v234_v13 = vmul.f32 0.38439733, %v218_v12  ;;  %v217_v14 = vld [vmem:[#allocation2 + $0x30] sm:$0xff]  ;;  %v226_v22 = vmul.f32 0.30780134, %v218_v12 }
  0x4e   : > { %v233_v15 = vmul.f32 0.38439733, %v217_v14  ;;  %v225_v23 = vmul.f32 0.30780134, %v217_v14 }
  0x4f   : > { %257 = vrot.lane.b32.xlu1 %v234_v13, %s518_s9 }
  0x50   : > { %255 = vrot.lane.b32.xlu0 %v233_v15, %s518_s9 }
  0x53   : > { %285 = vrot.lane.b32.xlu1 %v220_v16, %s519_s15 }
  0x54   : > { %283 = vrot.lane.b32.xlu0 %v219_v17, %s519_s15 }
  0x57   : > { %289 = vrot.lane.b32.xlu1 %v222_v18, %s519_s15 }
  0x58   : > { %287 = vrot.lane.b32.xlu0 %v221_v19, %s519_s15 }
  0x5b   : > { %293 = vrot.lane.b32.xlu1 %v224_v20, %s519_s15 }
  0x5c   : > { %291 = vrot.lane.b32.xlu0 %v223_v21, %s519_s15 }
  0x5f   : > { %297 = vrot.lane.b32.xlu1 %v226_v22, %s519_s15 }
  0x60   : > { %295 = vrot.lane.b32.xlu0 %v225_v23, %s519_s15 }
  0xb5   : > { %v248_v24 = vpop.permute.xlu1 %247  ;;  %v244_v25 = vpop.permute.xlu0 %243 }
  0xb6   : > { %v267_v34 = vadd.f32 %v244_v25, %v219_v17  ;;  %v269_v40 = vadd.f32 %v248_v24, %v221_v19 }
  0xb9   : > { %v250_v26 = vpop.permute.xlu1 %249 }
  0xba   : > { %v246_v27 = vpop.permute.xlu0 %245  ;;  %v270_v37 = vadd.f32 %v250_v26, %v222_v18 }
  0xbb   : > { %v268_v32 = vadd.f32 %v246_v27, %v220_v16 }
  0xbd   : > { %v254_v28 = vpop.permute.xlu1 %253 }
  0xbe   : > { %v252_v29 = vpop.permute.xlu0 %251  ;;  %v272_v43 = vadd.f32 %v254_v28, %v224_v20 }
  0xbf   : > { %v271_v46 = vadd.f32 %v252_v29, %v223_v21 }
  0xc1   : > { %v258_v30 = vpop.permute.xlu1 %257 }
  0xc2   : > { %v256_v31 = vpop.permute.xlu0 %255  ;;  %v274_v49 = vadd.f32 %v258_v30, %v226_v22 }
  0xc3   : > { %v273_v52 = vadd.f32 %v256_v31, %v225_v23 }
  0xc5   : > { %v286_v33 = vpop.permute.xlu1 %285 }
  0xc6   : > { %v308_v35 = vadd.f32 %v286_v33, %v268_v32  ;;  %v284_v36 = vpop.permute.xlu0 %283 }
  0xc7   : > { %v307_v38 = vadd.f32 %v284_v36, %v267_v34 }
  0xc8   : > { %318 = vst.msk [vmem:[%s659_s23 + $0x8] sm:$0x3f] %vm317_vm2, %v308_v35 }
  0xc9   : > { %v290_v39 = vpop.permute.xlu1 %289  ;;  %316 = vst.msk [vmem:[%s659_s23] sm:$0xff] %vm315_vm3, %v307_v38 }
  0xca   : > { %v310_v41 = vadd.f32 %v290_v39, %v270_v37  ;;  %v288_v42 = vpop.permute.xlu0 %287 }
  0xcb   : > { %v309_v44 = vadd.f32 %v288_v42, %v269_v40 }
  0xcc   : > { %320 = vst.msk [vmem:[%s659_s23 + $0x18] sm:$0x3f] %vm317_vm2, %v310_v41 }
  0xcd   : > { %v294_v45 = vpop.permute.xlu1 %293  ;;  %319 = vst.msk [vmem:[%s659_s23 + $0x10] sm:$0xff] %vm315_vm3, %v309_v44 }
  0xce   : > { %v312_v47 = vadd.f32 %v294_v45, %v272_v43  ;;  %v292_v48 = vpop.permute.xlu0 %291 }
  0xcf   : > { %v311_v50 = vadd.f32 %v292_v48, %v271_v46 }
  0xd0   : > { %322 = vst.msk [vmem:[%s659_s23 + $0x28] sm:$0x3f] %vm317_vm2, %v312_v47 }
  0xd1   : > { %v298_v51 = vpop.permute.xlu1 %297  ;;  %321 = vst.msk [vmem:[%s659_s23 + $0x20] sm:$0xff] %vm315_vm3, %v311_v50 }
  0xd2   : > { %v314_v53 = vadd.f32 %v298_v51, %v274_v49  ;;  %v296_v54 = vpop.permute.xlu0 %295 }
  0xd3   : > { %v313_v55 = vadd.f32 %v296_v54, %v273_v52 }
  0xd4   : > { %324 = vst.msk [vmem:[%s659_s23 + $0x38] sm:$0x3f] %vm317_vm2, %v314_v53 }
  0xd5   : > { %323 = vst.msk [vmem:[%s659_s23 + $0x30] sm:$0xff] %vm315_vm3, %v313_v55 }
  0xd6 PF: > { %p11_p8 = scmp.ge.s32.totalorder %s552_s11, 4   ;;  %s695_s6 = smov %s505_s7 }
  0xd7   : > { %s696_s7 = smov %s509_s8  ;;  %s697_s8 = smov %s562_s14 }
  0xd8   : > { %s698_s9 = smov %s552_s11  ;;  %13 = sbr.rel (!%p11_p8) target bundleno = 3 (0x3), region = 64 }
  0xdf   :  { %346 = vsyncpa [#allocation4], 1 }
  0xe0   :  { %348 = vsyncpa [#allocation4 + $0x1], 1 }

</bundles_post_ra>
